<compile_context>
chip_gen: v7x
topology: tpu7x:2x2x1
jax: 0.10.0
libtpu: 0.0.40
codegen_flags: <defaults>
</compile_context>

<pallas_src>
import jax
import jax.numpy as jnp
from jax.experimental import pallas as pl
from jax.experimental.pallas import tpu as pltpu

H1, H2 = 400, 300          # true hidden sizes (PyTorch module)
H1P, H2P = 512, 384        # lane-padded hidden sizes (multiples of 128)


def _round_up(x, m):
    return (x + m - 1) // m * m


def _cdiv(a, b):
    return (a + b - 1) // b


def _choose_tiling(B, tile_cap, min_tiles):
    """Pad B to a multiple of 16, then pick tb that divides the padded batch.

    Minimizes wasted rows (at most 15 + (n_tiles-1)*15) and lets the caller
    force >=2 tiles so both v7x TensorCores get work.
    """
    Bp = _round_up(max(B, 16), 16)
    n_tiles = max(min_tiles, _cdiv(Bp, tile_cap))
    tb = _round_up(_cdiv(Bp, n_tiles), 16)
    Bp = tb * n_tiles
    return tb, Bp, n_tiles


# ---------------------------------------------------------------------------
# Kernel
# ---------------------------------------------------------------------------
def _critic_kernel(s_ref, a_ref, w1_ref, b1_ref,
                   w2q_ref, w2a_ref, b2_ref,
                   w3_ref, b3_ref, out_ref):
    # l1: h1 = relu(state @ W1 + b1)                       -> [tb, H1P]
    h1 = jnp.dot(s_ref[...], w1_ref[...], preferred_element_type=jnp.float32)
    h1 = jnp.maximum(h1 + b1_ref[...], 0.0)

    # l2: h2 = relu(cat([h1, action], 1) @ W2 + b2)
    #        = relu(h1 @ W2_q + action @ W2_a + b2)        -> [tb, H2P]
    h2 = jnp.dot(h1.astype(jnp.bfloat16), w2q_ref[...],
                 preferred_element_type=jnp.float32)
    h2 = h2 + jnp.dot(a_ref[...], w2a_ref[...],
                      preferred_element_type=jnp.float32)
    h2 = jnp.maximum(h2 + b2_ref[...], 0.0)

    # l3 (N=1): VPU multiply + lane reduction (f32 weights), then a lane-dense
    # (1, 1, tb) store with the batch along lanes.
    out_row = jnp.sum(h2 * w3_ref[...], axis=-1)           # [tb]
    out_ref[0, 0, :] = out_row + b3_ref[0, 0]


# ---------------------------------------------------------------------------
# Wrapper
# ---------------------------------------------------------------------------
def critic_forward(state, action, kparams, *, tile_cap=1024, min_tiles=1):
    """state: [B, state_dim] f32, action: [B, action_dim] f32 -> [B, 1] f32.

    tile_cap: max batch-tile size (sweep 512/1024/2048; all fit scoped VMEM).
    min_tiles: set to 2 on v7x for medium batches so both TCs get a shard.
    """
    w1, b1, w2q, w2a, b2, w3, b3 = kparams
    B, state_dim = state.shape
    action_dim = action.shape[1]

    tb, Bp, n_tiles = _choose_tiling(B, tile_cap, min_tiles)

    # bf16 cast + batch pad.  (Ideally the bf16 cast happens where the replay
    # batch is prepared; doing it here keeps the script self-contained.)
    state = jnp.pad(state.astype(jnp.bfloat16), ((0, Bp - B), (0, 0)))
    action = jnp.pad(action.astype(jnp.bfloat16), ((0, Bp - B), (0, 0)))

    const = lambda i: (0, 0)                    # weights: same block every step

    out = pl.pallas_call(
        _critic_kernel,
        out_shape=jax.ShapeDtypeStruct((n_tiles, 1, tb), jnp.float32),
        grid=(n_tiles,),
        in_specs=[
            pl.BlockSpec((tb, state_dim), lambda i: (i, 0)),    # state tile
            pl.BlockSpec((tb, action_dim), lambda i: (i, 0)),   # action tile
            pl.BlockSpec((state_dim, H1P), const),              # W1
            pl.BlockSpec((1, H1P), const),                      # b1
            pl.BlockSpec((H1P, H2P), const),                    # W2_q
            pl.BlockSpec((action_dim, H2P), const),             # W2_a
            pl.BlockSpec((1, H2P), const),                      # b2
            pl.BlockSpec((1, H2P), const),                      # W3 (row, f32)
            pl.BlockSpec(memory_space=pltpu.MemorySpace.SMEM),  # b3 scalar
        ],
        out_specs=pl.BlockSpec((1, 1, tb), lambda i: (i, 0, 0)),
        compiler_params=pltpu.CompilerParams(
            dimension_semantics=("parallel",),
        ),
    )(state, action, w1, b1, w2q, w2a, b2, w3, b3)

    return out.reshape(-1)[:B].reshape(B, 1)


# ---------------------------------------------------------------------------
# Parameter init (PyTorch Linear default: U(-1/sqrt(fan_in), +)) and kernel prep
# ---------------------------------------------------------------------------
def init_critic_params(key, state_dim, action_dim):
    """Unpadded f32 params, stored transposed vs PyTorch ([in, out])."""
    ks = jax.random.split(key, 6)

    def uni(k, shape, fan_in):
        bound = 1.0 / jnp.sqrt(jnp.float32(fan_in))
        return jax.random.uniform(k, shape, jnp.float32, -bound, bound)

    w1 = uni(ks[0], (state_dim, H1), state_dim)
    b1 = uni(ks[1], (H1,), state_dim)
    fan2 = H1 + action_dim
    w2 = uni(ks[2], (fan2, H2), fan2)
    b2 = uni(ks[3], (H2,), fan2)
    w3 = uni(ks[4], (H2, 1), H2)
    b3 = uni(ks[5], (1,), H2)
    return (w1, b1, w2, b2, w3, b3)


def prepare_kernel_params(params):
    """Pad hidden dims to lane multiples, split W2 into q/action parts,
    cast MXU weights to bf16.  W3 stays f32 (used on the VPU).  Pads are
    exact zeros -> identical math on the real columns."""
    w1, b1, w2, b2, w3, b3 = params
    w2q, w2a = w2[:H1], w2[H1:]

    w1p = jnp.zeros((w1.shape[0], H1P), jnp.float32).at[:, :H1].set(w1)
    b1p = jnp.zeros((1, H1P), jnp.float32).at[0, :H1].set(b1)
    w2qp = jnp.zeros((H1P, H2P), jnp.float32).at[:H1, :H2].set(w2q)
    w2ap = jnp.zeros((w2a.shape[0], H2P), jnp.float32).at[:, :H2].set(w2a)
    b2p = jnp.zeros((1, H2P), jnp.float32).at[0, :H2].set(b2)
    w3p = jnp.zeros((1, H2P), jnp.float32).at[0, :H2].set(w3[:, 0])
    b3p = b3.reshape(1, 1).astype(jnp.float32)
    return (w1p.astype(jnp.bfloat16), b1p,
            w2qp.astype(jnp.bfloat16), w2ap.astype(jnp.bfloat16), b2p,
            w3p, b3p)


# ---------------------------------------------------------------------------
# References
# ---------------------------------------------------------------------------
def critic_ref_f32(state, action, params):
    """Pure-f32 reference with the original module's structure (cat + matmul)."""
    w1, b1, w2, b2, w3, b3 = params
    q = jax.nn.relu(state @ w1 + b1[None, :])
    q = jax.nn.relu(jnp.concatenate([q, action], axis=1) @ w2 + b2[None, :])
    return q @ w3 + b3[None, :]


def critic_ref_bf16(state, action, params):
    """Reference mirroring the kernel's numerics: bf16 dot inputs, f32
    accumulation, final layer as f32 multiply + lane reduce with f32 w3."""
    w1, b1, w2, b2, w3, b3 = params
    bf = jnp.bfloat16

    def bdot(x, w):
        return jnp.dot(x.astype(bf), w.astype(bf),
                       preferred_element_type=jnp.float32)

    q = jax.nn.relu(bdot(state, w1) + b1[None, :])
    qa = jnp.concatenate([q, action], axis=1)
    q = jax.nn.relu(bdot(qa, w2) + b2[None, :])
    return jnp.sum(q * w3[:, 0][None, :], axis=-1, keepdims=True) + b3[None, :]


# ---------------------------------------------------------------------------
if __name__ == "__main__":
    state_dim, action_dim = 16, 4
    key = jax.random.PRNGKey(0)
    k_s, k_a, k_p, k_s2, k_a2 = jax.random.split(key, 5)

    params = init_critic_params(k_p, state_dim, action_dim)
    kparams = prepare_kernel_params(params)

    # Small-shape test (B = 2): padded to one 16-row tile inside the wrapper.
    B = 2
    state = jax.random.normal(k_s, (B, state_dim), jnp.float32)
    action = jax.random.normal(k_a, (B, action_dim), jnp.float32)

    out = jax.block_until_ready(critic_forward(state, action, kparams))
    assert out.shape == (B, 1), out.shape
    assert jnp.allclose(out, critic_ref_bf16(state, action, params),
                        atol=5e-3, rtol=5e-3)
    assert jnp.allclose(out, critic_ref_f32(state, action, params),
                        atol=5e-2, rtol=5e-2)

    # Larger batch: single 304-row tile (only 4 padded rows instead of 212).
    B2 = 300
    state2 = jax.random.normal(k_s2, (B2, state_dim), jnp.float32)
    action2 = jax.random.normal(k_a2, (B2, action_dim), jnp.float32)
    out2 = jax.block_until_ready(critic_forward(state2, action2, kparams))
    assert out2.shape == (B2, 1), out2.shape
    ref2 = critic_ref_bf16(state2, action2, params)
    assert jnp.allclose(out2, ref2, atol=5e-3, rtol=5e-3)

    # Same batch with min_tiles=2 (v7x megacore path): exercises the
    # multi-tile grid + lane-dense output slab reshape.
    out3 = jax.block_until_ready(
        critic_forward(state2, action2, kparams, min_tiles=2))
    assert out3.shape == (B2, 1), out3.shape
    assert jnp.allclose(out3, ref2, atol=5e-3, rtol=5e-3)

    print("KERNEL_OK")
</pallas_src>

<mosaic_0001>
module attributes {stable_mosaic.version = 11 : i64} {
  func.func @_critic_kernel(%arg0: i32, %arg1: memref<16x16xbf16, #tpu.memory_space<vmem>>, %arg2: memref<16x4xbf16, #tpu.memory_space<vmem>>, %arg3: memref<16x512xbf16, #tpu.memory_space<vmem>>, %arg4: memref<1x512xf32, #tpu.memory_space<vmem>>, %arg5: memref<512x384xbf16, #tpu.memory_space<vmem>>, %arg6: memref<4x384xbf16, #tpu.memory_space<vmem>>, %arg7: memref<1x384xf32, #tpu.memory_space<vmem>>, %arg8: memref<1x384xf32, #tpu.memory_space<vmem>>, %arg9: memref<1x1xf32, #tpu.memory_space<smem>>, %arg10: memref<1x1x16xf32, #tpu.memory_space<vmem>>) attributes {dimension_semantics = [#tpu.dimension_semantics<parallel>], iteration_bounds = array<i64: 1>, scalar_prefetch = 0 : i64, scratch_operands = 0 : i64, tpu.core_type = #tpu.core_type<tc>, window_params = [{transform_indices = @transform_0, window_bounds = array<i64: 16, 16>}, {transform_indices = @transform_1, window_bounds = array<i64: 16, 4>}, {pipeline_mode = #tpu.pipeline_mode<synchronous>, transform_indices = @transform_2, window_bounds = array<i64: 16, 512>}, {pipeline_mode = #tpu.pipeline_mode<synchronous>, transform_indices = @transform_3, window_bounds = array<i64: 1, 512>}, {pipeline_mode = #tpu.pipeline_mode<synchronous>, transform_indices = @transform_4, window_bounds = array<i64: 512, 384>}, {pipeline_mode = #tpu.pipeline_mode<synchronous>, transform_indices = @transform_5, window_bounds = array<i64: 4, 384>}, {pipeline_mode = #tpu.pipeline_mode<synchronous>, transform_indices = @transform_6, window_bounds = array<i64: 1, 384>}, {pipeline_mode = #tpu.pipeline_mode<synchronous>, transform_indices = @transform_7, window_bounds = array<i64: 1, 384>}, {transform_indices = @transform_8, window_bounds = array<i64: 1, 1>}, {transform_indices = @transform_9, window_bounds = array<i64: 1, 1, 16>}]} {
    %c0 = arith.constant 0 : index
    %c0_0 = arith.constant 0 : index
    %0 = vector.load %arg1[%c0, %c0_0] : memref<16x16xbf16, #tpu.memory_space<vmem>>, vector<16x16xbf16>
    %c0_1 = arith.constant 0 : index
    %c0_2 = arith.constant 0 : index
    %1 = vector.load %arg3[%c0_1, %c0_2] : memref<16x512xbf16, #tpu.memory_space<vmem>>, vector<16x512xbf16>
    %cst = arith.constant dense<0.000000e+00> : vector<16x512xf32>
    %2 = tpu.matmul %0, %1, %cst {dimension_numbers = #tpu.dot_dimension_numbers<[1], [0], [0], [1], [0, 0, 1, 1], [], []>} : vector<16x16xbf16>, vector<16x512xbf16>, vector<16x512xf32> -> vector<16x512xf32>
    %c0_3 = arith.constant 0 : index
    %c0_4 = arith.constant 0 : index
    %3 = vector.load %arg4[%c0_3, %c0_4] : memref<1x512xf32, #tpu.memory_space<vmem>>, vector<1x512xf32>
    %4 = vector.broadcast %3 : vector<1x512xf32> to vector<16x512xf32>
    %5 = arith.addf %2, %4 : vector<16x512xf32>
    %cst_5 = arith.constant 0.000000e+00 : f32
    %6 = vector.broadcast %cst_5 : f32 to vector<16x512xf32>
    %7 = arith.maximumf %5, %6 : vector<16x512xf32>
    %8 = arith.truncf %7 : vector<16x512xf32> to vector<16x512xbf16>
    %c0_6 = arith.constant 0 : index
    %c0_7 = arith.constant 0 : index
    %9 = vector.load %arg5[%c0_6, %c0_7] : memref<512x384xbf16, #tpu.memory_space<vmem>>, vector<512x384xbf16>
    %cst_8 = arith.constant dense<0.000000e+00> : vector<16x384xf32>
    %10 = tpu.matmul %8, %9, %cst_8 {dimension_numbers = #tpu.dot_dimension_numbers<[1], [0], [0], [1], [0, 0, 1, 1], [], []>} : vector<16x512xbf16>, vector<512x384xbf16>, vector<16x384xf32> -> vector<16x384xf32>
    %c0_9 = arith.constant 0 : index
    %c0_10 = arith.constant 0 : index
    %11 = vector.load %arg2[%c0_9, %c0_10] : memref<16x4xbf16, #tpu.memory_space<vmem>>, vector<16x4xbf16>
    %c0_11 = arith.constant 0 : index
    %c0_12 = arith.constant 0 : index
    %12 = vector.load %arg6[%c0_11, %c0_12] : memref<4x384xbf16, #tpu.memory_space<vmem>>, vector<4x384xbf16>
    %cst_13 = arith.constant dense<0.000000e+00> : vector<16x384xf32>
    %13 = tpu.matmul %11, %12, %cst_13 {dimension_numbers = #tpu.dot_dimension_numbers<[1], [0], [0], [1], [0, 0, 1, 1], [], []>} : vector<16x4xbf16>, vector<4x384xbf16>, vector<16x384xf32> -> vector<16x384xf32>
    %14 = arith.addf %10, %13 : vector<16x384xf32>
    %c0_14 = arith.constant 0 : index
    %c0_15 = arith.constant 0 : index
    %15 = vector.load %arg7[%c0_14, %c0_15] : memref<1x384xf32, #tpu.memory_space<vmem>>, vector<1x384xf32>
    %16 = vector.broadcast %15 : vector<1x384xf32> to vector<16x384xf32>
    %17 = arith.addf %14, %16 : vector<16x384xf32>
    %cst_16 = arith.constant 0.000000e+00 : f32
    %18 = vector.broadcast %cst_16 : f32 to vector<16x384xf32>
    %19 = arith.maximumf %17, %18 : vector<16x384xf32>
    %c0_17 = arith.constant 0 : index
    %c0_18 = arith.constant 0 : index
    %20 = vector.load %arg8[%c0_17, %c0_18] : memref<1x384xf32, #tpu.memory_space<vmem>>, vector<1x384xf32>
    %21 = vector.broadcast %20 : vector<1x384xf32> to vector<16x384xf32>
    %22 = arith.mulf %19, %21 : vector<16x384xf32>
    %cst_19 = arith.constant dense<0.000000e+00> : vector<16xf32>
    %23 = vector.multi_reduction <add>, %22, %cst_19 [1] : vector<16x384xf32> to vector<16xf32>
    %c0_20 = arith.constant 0 : index
    %c0_21 = arith.constant 0 : index
    %24 = memref.load %arg9[%c0_20, %c0_21] : memref<1x1xf32, #tpu.memory_space<smem>>
    %25 = vector.broadcast %24 : f32 to vector<16xf32>
    %26 = arith.addf %23, %25 : vector<16xf32>
    %c0_22 = arith.constant 0 : index
    %c0_23 = arith.constant 0 : index
    %c0_24 = arith.constant 0 : index
    %27 = vector.load %arg10[%c0_22, %c0_23, %c0_24] : memref<1x1x16xf32, #tpu.memory_space<vmem>>, vector<1x1x16xf32>
    %28 = vector.shape_cast %27 : vector<1x1x16xf32> to vector<16xf32>
    %29 = vector.shape_cast %26 : vector<16xf32> to vector<1x1x16xf32>
    tpu.vector_store %arg10[%c0_22, %c0_23, %c0_24], %29 {strides = array<i32>} : memref<1x1x16xf32, #tpu.memory_space<vmem>>, vector<1x1x16xf32>,
    return
  }
  func.func @transform_0(%arg0: i32) -> (i32, i32) {
    %c0_i32 = arith.constant 0 : i32
    %c0_i32_0 = arith.constant 0 : i32
    return %arg0, %c0_i32 : i32, i32
  }
  func.func @transform_1(%arg0: i32) -> (i32, i32) {
    %c0_i32 = arith.constant 0 : i32
    %c0_i32_0 = arith.constant 0 : i32
    return %arg0, %c0_i32 : i32, i32
  }
  func.func @transform_2(%arg0: i32) -> (i32, i32) {
    %c0_i32 = arith.constant 0 : i32
    %c0_i32_0 = arith.constant 0 : i32
    %c0_i32_1 = arith.constant 0 : i32
    return %c0_i32, %c0_i32_0 : i32, i32
  }
  func.func @transform_3(%arg0: i32) -> (i32, i32) {
    %c0_i32 = arith.constant 0 : i32
    %c0_i32_0 = arith.constant 0 : i32
    %c0_i32_1 = arith.constant 0 : i32
    return %c0_i32, %c0_i32_0 : i32, i32
  }
  func.func @transform_4(%arg0: i32) -> (i32, i32) {
    %c0_i32 = arith.constant 0 : i32
    %c0_i32_0 = arith.constant 0 : i32
    %c0_i32_1 = arith.constant 0 : i32
    return %c0_i32, %c0_i32_0 : i32, i32
  }
  func.func @transform_5(%arg0: i32) -> (i32, i32) {
    %c0_i32 = arith.constant 0 : i32
    %c0_i32_0 = arith.constant 0 : i32
    %c0_i32_1 = arith.constant 0 : i32
    return %c0_i32, %c0_i32_0 : i32, i32
  }
  func.func @transform_6(%arg0: i32) -> (i32, i32) {
    %c0_i32 = arith.constant 0 : i32
    %c0_i32_0 = arith.constant 0 : i32
    %c0_i32_1 = arith.constant 0 : i32
    return %c0_i32, %c0_i32_0 : i32, i32
  }
  func.func @transform_7(%arg0: i32) -> (i32, i32) {
    %c0_i32 = arith.constant 0 : i32
    %c0_i32_0 = arith.constant 0 : i32
    %c0_i32_1 = arith.constant 0 : i32
    return %c0_i32, %c0_i32_0 : i32, i32
  }
  func.func @transform_8(%arg0: i32) -> (i32, i32) {
    %c0_i32 = arith.constant 0 : i32
    %c0_i32_0 = arith.constant 0 : i32
    %c0_i32_1 = arith.constant 0 : i32
    return %c0_i32, %c0_i32_0 : i32, i32
  }
  func.func @transform_9(%arg0: i32) -> (i32, i32, i32) {
    %c0_i32 = arith.constant 0 : i32
    %c0_i32_0 = arith.constant 0 : i32
    %c0_i32_1 = arith.constant 0 : i32
    return %arg0, %c0_i32, %c0_i32_0 : i32, i32, i32
  }
}

</mosaic_0001>

<bundles_post_ra>
// kernel: tpu_custom_call.1
= control target key start
LH: loop header
LB: loop body
LE: loop exit
PB: predicated region body
PF: predicated region fallthrough
CT: control target
= control target key end

     0   :  { %15 = vsyncpa [#allocation4], 0  ;;  %s1807_s0 = inlined_call_operand.vmem [shape: bf16[16,16], index: 0, kind: input, shape index: {}]   ;;  %s1808_s1 = inlined_call_operand.vmem [shape: bf16[16,4], index: 1, kind: input, shape index: {}]   ;;  %s1809_s2 = inlined_call_operand.hbm [shape: bf16[16,512], index: 2, kind: input, shape index: {}]   ;;  %s1810_s3 = inlined_call_operand.vmem [shape: f32[1,512], index: 3, kind: input, shape index: {}]   ;;  %s1811_s4 = inlined_call_operand.hbm [shape: bf16[512,384], index: 4, kind: input, shape index: {}]   ;;  %s1812_s5 = inlined_call_operand.vmem [shape: bf16[4,384], index: 5, kind: input, shape index: {}]   ;;  %s1813_s6 = inlined_call_operand.vmem [shape: f32[1,384], index: 6, kind: input, shape index: {}]   ;;  %s1814_s7 = inlined_call_operand.vmem [shape: f32[1,384], index: 7, kind: input, shape index: {}]   ;;  %s1815_s8 = inlined_call_operand.<no memory space> [shape: f32[1,1], index: 8, kind: input, shape index: {}]   ;;  %s1816_s9 = inlined_call_operand.hbm [shape: f32[1,1,16], index: 9, kind: output, shape index: {}]  }
   0x1   :  { %16 = vsyncpa [#allocation7], 0 }
   0x2   :  { %17 = vsyncpa [#allocation5], 0  ;;  %s1634_s30 = smov [#allocation3]   ;;  %s1562_s13 = scalar_lea.hbm %s1809_s2, 512 }
   0x3   :  { %s27_s10 = sshll.u32 %s1634_s30, 4  ;;  %p1563_p0 = scmp.ne.s32.totalorder %s1809_s2, %s1562_s13  ;;  %s28_s10 = int_to_ptr.vmem [resolvable:$true] %s27_s10 }
   0x4   :  { %p1566_p1 = scmp.lt.u32.totalorder %s1562_s13, %s1809_s2 }
   0x6   :  { %p1568_p2 = pnand %p1566_p1, %p1563_p0 }
   0x8   :  { %1571 = shalt.err (!%p1568_p2)
}
   0x9   :  { %s1572_s18 = scalar_lea.vmem %s28_s10, 512  ;;  %p1577_p4 = scmp.lt.s32.totalorder %s28_s10, %s28_s10 }
   0xa   :  { %p1573_p3 = scmp.ne.s32.totalorder %s28_s10, %s1572_s18  ;;  %p1578_p5 = scmp.lt.s32.totalorder %s1572_s18, %s1572_s18 }
   0xc   :  { %p1579_p6 = por %p1578_p5, %p1577_p4 }
   0xe   :  { %p1580_p7 = pnand %p1579_p6, %p1573_p3 }
  0x10   :  { %1583 = shalt.err (!%p1580_p7)
}
  0x11   :  { %s1635_s19 = smov 256   ;;  %s1636_s20 = smov 16  }
  0x12   :  { %33 = dma.hbm_to_vmem [thread:$0]  %s1809_s2, 512, %s28_s10, [#allocation4], %s1635_s19, %s1635_s19, %s1636_s20  }
  0x13   :  { %s1637_s23 = smov [#allocation6]   ;;  %s1584_s27 = scalar_lea.hbm %s1811_s4, 12288 }
  0x14   :  { %s41_s24 = sshll.u32 %s1637_s23, 4  ;;  %p1585_p8 = scmp.ne.s32.totalorder %s1811_s4, %s1584_s27  ;;  %s42_s24 = int_to_ptr.vmem [resolvable:$true] %s41_s24 }
  0x15   :  { %p1588_p9 = scmp.lt.u32.totalorder %s1584_s27, %s1811_s4 }
  0x17   :  { %p1590_p10 = pnand %p1588_p9, %p1585_p8 }
  0x19   :  { %1593 = shalt.err (!%p1590_p10)
}
  0x1a   :  { %s1594_s12 = scalar_lea.vmem %s42_s24, 12288  ;;  %p1599_p12 = scmp.lt.s32.totalorder %s42_s24, %s42_s24 }
  0x1b   :  { %p1595_p11 = scmp.ne.s32.totalorder %s42_s24, %s1594_s12  ;;  %p1600_p13 = scmp.lt.s32.totalorder %s1594_s12, %s1594_s12 }
  0x1d   :  { %p1601_p0 = por %p1600_p13, %p1599_p12 }
  0x1f   :  { %p1602_p1 = pnand %p1601_p0, %p1595_p11 }
  0x21   :  { %1605 = shalt.err (!%p1602_p1)
}
  0x22   :  { %s1638_s2 = smov 192   ;;  %s1639_s10 = smov 12  }
  0x23   :  { %47 = dma.hbm_to_vmem [thread:$0]  %s1811_s4, 12288, %s42_s24, [#allocation7], %s1638_s2, %s1638_s2, %s1639_s10  }
  0x24   :  { %1628 = dma.done.wait [#allocation4], 512  }
  0x25   :  { %1629 = vsyncadd [#allocation4], 4294966784 }
  0x26   :  { %1630 = dma.done.wait [#allocation7], 12288  }
  0x27   :  { %1631 = vsyncadd [#allocation7], 4294955008  ;;  %v1640_v0 = vmov 0   ;;  %v1425_v1 = vld [vmem:[#allocation3 + $0x4] ss:$16 sps:$4 sm:$0xff]   ;;  %v71_v2 = vlaneseq  ;;  %vm116_vm0 = vcmask 130048  }
  0x28   :  { %152 = vmatprep.mubr.bf16.mxu1 %v1640_v0  ;;  %v1641_v3 = vmov 1983009808   ;;  %v1427_v5 = vld [vmem:[#allocation3] ss:$16 sps:$4 sm:$0xff]   ;;  %120 = vmatprep.subr.bf16.mxu1 %v1425_v1  ;;  %v1429_v7 = vld [vmem:[#allocation3 + $0x8] ss:$16 sps:$4 sm:$0xff]  }
  0x29   :  { %v357_v4 = vunpack.c.l.s4 %v1641_v3  ;;  %v1428_v6 = vld [vmem:[%s1807_s0] sm:$0xff]   ;;  %121 = vmatpush1.bf16.msra.mxu1 %v1427_v5  ;;  %v1431_v8 = vld [vmem:[#allocation3 + $0xc] ss:$16 sps:$4 sm:$0xff]   ;;  %v1723_v11 = vshrl.u32 %v71_v2, 7  ;;  %vm375_vm1 = vcmask 1041408   ;;  %vm371_vm2 = vcmask 31744  }
  0x2a   :  { %v1432_v9 = vld [vmem:[#allocation6 + $0x4] ss:$12 sps:$4 sm:$0xff]   ;;  %v1434_v10 = vld [vmem:[#allocation6] ss:$12 sps:$4 sm:$0xff]   ;;  %163 = vmatprep.subr.bf16.mxu1 %v1431_v8  ;;  %v1435_v13 = vld [vmem:[#allocation6 + $0x1c] ss:$12 sps:$4 sm:$0xff]  }
  0x2b   :  { %v358_v12 = vunpack.c.0.s8 %v357_v4  ;;  %981 = vmatprep.subr.bf16.mxu0 %v1432_v9  ;;  %v1437_v14 = vld [vmem:[#allocation6 + $0x18] ss:$12 sps:$4 sm:$0xff]   ;;  %v1438_v16 = vld [vmem:[#allocation6 + $0x34] ss:$12 sps:$4 sm:$0xff]   ;;  %v1440_v18 = vld [vmem:[#allocation6 + $0x30] ss:$12 sps:$4 sm:$0xff]  }
  0x2c   :  { %1252 = vmatmul.mubr.msk.bf16.vlgmr.msra.gmra.mrb[0].mxu1 %vm116_vm0, %v1428_v6  ;;  %982 = vmatpush1.bf16.msra.mxu0 %v1434_v10  ;;  %v348_v17 = vld [vmem:[%s1812_s5] sm:$0x3f]  ;;  %v1441_v21 = vld [vmem:[#allocation6 + $0x4c] ss:$12 sps:$4 sm:$0xff]   ;;  %v1443_v25 = vld [vmem:[#allocation6 + $0x48] ss:$12 sps:$4 sm:$0xff]  }
  0x2d   :  { %164 = vmatpush1.bf16.msra.mxu1 %v1429_v7  ;;  %195 = vmatprep.mubr.bf16.mxu1 %v1640_v0  ;;  %v361_v15 = vsub.s32 %v358_v12, %v1723_v11  ;;  %v355_v20 = vcombine.high %v348_v17, %v348_v17  ;;  %v1444_v26 = vld [vmem:[#allocation6 + $0x64] ss:$12 sps:$4 sm:$0xff]   ;;  %v1642_v28 = vmov 0.0   ;;  %v1446_v29 = vld [vmem:[#allocation6 + $0x60] ss:$12 sps:$4 sm:$0xff]   ;;  %vm1643_vm3 = vmmov 0  }
  0x2e   :  { %983 = vmatprep.subr.bf16.mxu0 %v1435_v13  ;;  %v1452_v27 = vld [vmem:[%s1808_s1] sm:$0xff]   ;;  %v1460_v31 = vld [vmem:[#allocation6 + $0xc8] ss:$12 sps:$4 sm:$0xff]   ;;  %v1453_v35 = vld [vmem:[#allocation6 + $0x90] ss:$12 sps:$4 sm:$0xff]   ;;  %v1740_v8 = vsub.s32 0, %v1723_v11 }
  0x2f   :  { %v362_v19 = vrot.slane %v348_v17, %v361_v15  ;;  %v369_v24 = vrot.slane %v355_v20, %v361_v15  ;;  %v1447_v32 = vld [vmem:[#allocation6 + $0x7c] ss:$12 sps:$4 sm:$0xff]   ;;  %v1449_v33 = vld [vmem:[#allocation6 + $0x78] ss:$12 sps:$4 sm:$0xff]   ;;  %v1450_v34 = vld [vmem:[#allocation6 + $0x94] ss:$12 sps:$4 sm:$0xff]  }
  0x30   :  { %984 = vmatpush1.bf16.msra.mxu0 %v1437_v14  ;;  %v1462_v36 = vld [vmem:[#allocation6 + $0x8] ss:$12 sps:$4 sm:$0xff]   ;;  %v1465_v37 = vld [vmem:[#allocation6 + $0xe0] ss:$12 sps:$4 sm:$0xff]   ;;  %v1470_v41 = vld [vmem:[#allocation6 + $0xf8] ss:$12 sps:$4 sm:$0xff]  }
  0x31   :  { %985 = vmatprep.subr.bf16.mxu0 %v1438_v16  ;;  %v370_v22 = vcombine.high %v362_v19, %v362_v19  ;;  %v377_v23 = vsel %vm375_vm1, %v362_v19, 0  ;;  %v383_v30 = vsel %vm375_vm1, %v369_v24, 0  ;;  %v1454_v38 = vld [vmem:[#allocation6 + $0xac] ss:$12 sps:$4 sm:$0xff]   ;;  %v1457_v39 = vld [vmem:[#allocation6 + $0xa8] ss:$12 sps:$4 sm:$0xff]  }
  0x32   :  { %v1467_v40 = vld [vmem:[#allocation6 + $0x20] ss:$12 sps:$4 sm:$0xff]   ;;  %v1458_v42 = vld [vmem:[#allocation6 + $0xc4] ss:$12 sps:$4 sm:$0xff]   ;;  %v1463_v44 = vld [vmem:[#allocation6 + $0xdc] ss:$12 sps:$4 sm:$0xff]  }
  0x33   :  { %1255 = vmatprep.subr.msk.bf16.mxu1 %vm375_vm1, %v370_v22  ;;  %v1461_v43 = vld [vmem:[#allocation6 + $0xc0] ss:$12 sps:$4 sm:$0xff]   ;;  %v1472_v45 = vld [vmem:[#allocation6 + $0x38] ss:$12 sps:$4 sm:$0xff]   ;;  %v1475_v46 = vld [vmem:[#allocation6 + $0x110] ss:$12 sps:$4 sm:$0xff]  }
  0x34   :  { %1253 = vmatmul.mubr.msk.bf16.vlgmr.msra.gmra.mrb[4].mxu1 %vm116_vm0, %v1428_v6  ;;  %986 = vmatpush1.bf16.msra.mxu0 %v1440_v18  ;;  %v1477_v47 = vld [vmem:[#allocation6 + $0x50] ss:$12 sps:$4 sm:$0xff]   ;;  %v1466_v48 = vld [vmem:[#allocation6 + $0xd8] ss:$12 sps:$4 sm:$0xff]   ;;  %v1480_v49 = vld [vmem:[#allocation6 + $0x128] ss:$12 sps:$4 sm:$0xff]  }
  0x35   :  { %417 = vmatprep.mubr.bf16.mxu1 %v1640_v0  ;;  %987 = vmatprep.subr.bf16.mxu0 %v1441_v21  ;;  %v1468_v50 = vld [vmem:[#allocation6 + $0xf4] ss:$12 sps:$4 sm:$0xff]   ;;  %v1471_v52 = vld [vmem:[#allocation6 + $0xf0] ss:$12 sps:$4 sm:$0xff]   ;;  %v1473_v54 = vld [vmem:[#allocation6 + $0x10c] ss:$12 sps:$4 sm:$0xff]  }
  0x36   :  { %386 = vmatpush1.bf16.msra.mxu1 %v377_v23  ;;  %v1482_v51 = vld [vmem:[#allocation6 + $0x68] ss:$12 sps:$4 sm:$0xff]   ;;  %v1485_v53 = vld [vmem:[#allocation6 + $0x140] ss:$12 sps:$4 sm:$0xff]   ;;  %v1478_v57 = vld [vmem:[#allocation6 + $0x124] ss:$12 sps:$4 sm:$0xff]  }
  0x37   :  { %1400 = vmatprep.subr.bf16.mxu1 %v1642_v28  ;;  %v1487_v55 = vld [vmem:[#allocation6 + $0x80] ss:$12 sps:$4 sm:$0xff]   ;;  %v1476_v56 = vld [vmem:[#allocation6 + $0x108] ss:$12 sps:$4 sm:$0xff]   ;;  %v1486_v60 = vld [vmem:[#allocation6 + $0x138] ss:$12 sps:$4 sm:$0xff]  }
  0x38   :  { %988 = vmatpush1.bf16.msra.mxu0 %v1443_v25  ;;  %v1481_v58 = vld [vmem:[#allocation6 + $0x120] ss:$12 sps:$4 sm:$0xff]   ;;  %v1483_v59 = vld [vmem:[#allocation6 + $0x13c] ss:$12 sps:$4 sm:$0xff]   ;;  %v1490_v62 = vld [vmem:[#allocation6 + $0x158] ss:$12 sps:$4 sm:$0xff]  }
  0x39   :  { %989 = vmatprep.subr.bf16.mxu0 %v1444_v26  ;;  %v1488_v61 = vld [vmem:[#allocation6 + $0x154] ss:$12 sps:$4 sm:$0xff]   ;;  %v1491_v63 = vld [vmem:[#allocation6 + $0x150] ss:$12 sps:$4 sm:$0xff]   ;;  %v1492_v0 = vld [vmem:[#allocation6 + $0x98] ss:$12 sps:$4 sm:$0xff]  }
  0x3a   :  { %v1493_v1 = vld [vmem:[#allocation6 + $0x16c] ss:$12 sps:$4 sm:$0xff]   ;;  %v1495_v3 = vld [vmem:[#allocation6 + $0x170] ss:$12 sps:$4 sm:$0xff]   ;;  %v1496_v4 = vld [vmem:[#allocation6 + $0x168] ss:$12 sps:$4 sm:$0xff]  }
  0x3b   :  { %v1497_v5 = vld [vmem:[#allocation6 + $0xb0] ss:$12 sps:$4 sm:$0xff]   ;;  %v1501_v7 = vld [vmem:[#allocation6 + $0x248] ss:$12 sps:$4 sm:$0xff]   ;;  %v69_v9 = vld [vmem:[%s1810_s3] sm:$0xf] }
  0x3c   :  { %1256 = vmatmul.mubr.msk.bf16.vlgmr.msra.gmra.mrb[8].mxu1 %vm371_vm2, %v1452_v27  ;;  %990 = vmatpush1.bf16.msra.mxu0 %v1446_v29  ;;  %v1500_v6 = vld [vmem:[#allocation6 + $0x184] ss:$12 sps:$4 sm:$0xff]   ;;  %v1746_v10 = vsub.s32 1, %v1723_v11  ;;  %v74_v12 = vrot.slane %v69_v9, %v1740_v8  ;;  %v1751_v17 = vsub.s32 2, %v1723_v11  ;;  %v85_v20 = vsub.s32 3, %v1723_v11  ;;  %s1644_s22 = smov [#allocation8]  }
  0x3d   :  { %1401 = vmatpush3.bf16.msra.mxu1 %v383_v30  ;;  %1402 = vmatprep.mubr.msk.bf16.mxu1 %vm1643_vm3, %v1642_v28  ;;  %s1237_s23 = sshll.u32 %s1644_s22, 4  ;;  %vm1226_vm4 = vcmask 130112   ;;  %vm1229_vm5 = vcmask 122880   ;;  %s1238_s23 = int_to_ptr.vmem [resolvable:$true] %s1237_s23 }
  0x3e   :  { %1356 = vmatprep.subr.bf16.mxu1 %v1460_v31  ;;  %991 = vmatprep.subr.bf16.mxu0 %v1447_v32  ;;  %v78_v13 = vrot.slane %v69_v9, %v1746_v10  ;;  %v82_v26 = vrot.slane %v69_v9, %v1751_v17  ;;  %v86_v29 = vrot.slane %v69_v9, %v85_v20  ;;  %v1498_v32 = vld [vmem:[#allocation6 + $0x180] ss:$12 sps:$4 sm:$0xff]   ;;  %v1532_v20 = vld [vmem:[#allocation6 + $0x218] ss:$12 sps:$4 sm:$0xff]   ;;  %s1606_s24 = scalar_lea.vmem %s1238_s23, 16  ;;  %p1611_p3 = scmp.lt.s32.totalorder %s1238_s23, %s1238_s23 }
  0x3f   :  { %p1607_p2 = scmp.ne.s32.totalorder %s1238_s23, %s1606_s24 }
  0x40   :  { %992 = vmatpush1.bf16.msra.mxu0 %v1449_v33  ;;  %v1502_v33 = vld [vmem:[#allocation6 + $0x188] ss:$12 sps:$4 sm:$0xff]  }
  0x41   :  { %993 = vmatprep.subr.bf16.mxu0 %v1450_v34 }
  0x44   :  { %1403 = vmatmul.mubr.msk.bf16.vlgmr.msra.gmra.mrb[12].mxu1 %vm371_vm2, %v1452_v27  ;;  %994 = vmatpush1.bf16.msra.mxu0 %v1453_v35  ;;  %v1505_v35 = vld [vmem:[#allocation6 + $0x19c] ss:$12 sps:$4 sm:$0xff]  }
  0x45   :  { %1357 = vmatpush3.bf16.msra.mxu1 %v1462_v36  ;;  %995 = vmatprep.subr.bf16.mxu0 %v1454_v38  ;;  %v1506_v36 = vld [vmem:[#allocation6 + $0x260] ss:$12 sps:$4 sm:$0xff]  }
  0x46   :  { %1358 = vmatprep.subr.bf16.mxu1 %v1465_v37 }
  0x48   :  { %996 = vmatpush1.bf16.msra.mxu0 %v1457_v39 }
  0x49   :  { %1359 = vmatpush3.bf16.msra.mxu1 %v1467_v40  ;;  %997 = vmatprep.subr.bf16.mxu0 %v1458_v42 }
  0x4a   :  { %1360 = vmatprep.subr.bf16.mxu1 %v1470_v41 }
  0x4c   :  { %998 = vmatpush1.bf16.msra.mxu0 %v1461_v43 }
  0x4d   :  { %1361 = vmatpush3.bf16.msra.mxu1 %v1472_v45  ;;  %999 = vmatprep.subr.bf16.mxu0 %v1463_v44  ;;  %v1503_v44 = vld [vmem:[#allocation6 + $0x198] ss:$12 sps:$4 sm:$0xff]   ;;  %v1507_v45 = vld [vmem:[#allocation6 + $0x1a0] ss:$12 sps:$4 sm:$0xff]  }
  0x4e   :  { %1362 = vmatprep.subr.bf16.mxu1 %v1475_v46 }
  0x50   :  { %1000 = vmatpush1.bf16.msra.mxu0 %v1466_v48  ;;  %v1510_v48 = vld [vmem:[#allocation6 + $0x1b4] ss:$12 sps:$4 sm:$0xff]  }
  0x51   :  { %1363 = vmatpush3.bf16.msra.mxu1 %v1477_v47  ;;  %1001 = vmatprep.subr.bf16.mxu0 %v1468_v50 }
  0x52   :  { %1364 = vmatprep.subr.bf16.mxu1 %v1480_v49  ;;  %v1511_v49 = vld [vmem:[#allocation6 + $0x278] ss:$12 sps:$4 sm:$0xff]  }
  0x54   :  { %1002 = vmatpush1.bf16.msra.mxu0 %v1471_v52 }
  0x55   :  { %1365 = vmatpush3.bf16.msra.mxu1 %v1482_v51  ;;  %1003 = vmatprep.subr.bf16.mxu0 %v1473_v54  ;;  %v1512_v54 = vld [vmem:[#allocation6 + $0x1b8] ss:$12 sps:$4 sm:$0xff]  }
  0x56   :  { %1366 = vmatprep.subr.bf16.mxu1 %v1485_v53  ;;  %v1508_v53 = vld [vmem:[#allocation6 + $0x1b0] ss:$12 sps:$4 sm:$0xff]  }
  0x58   :  { %1004 = vmatpush1.bf16.msra.mxu0 %v1476_v56 }
  0x59   :  { %1367 = vmatpush3.bf16.msra.mxu1 %v1487_v55  ;;  %1005 = vmatprep.subr.bf16.mxu0 %v1478_v57  ;;  %v1515_v57 = vld [vmem:[#allocation6 + $0x1cc] ss:$12 sps:$4 sm:$0xff]  }
  0x5a   :  { %1368 = vmatprep.subr.bf16.mxu1 %v1490_v62  ;;  %v1513_v62 = vld [vmem:[#allocation6 + $0x1c8] ss:$12 sps:$4 sm:$0xff]  }
  0x5c   :  { %1006 = vmatpush1.bf16.msra.mxu0 %v1481_v58  ;;  %v1516_v58 = vld [vmem:[#allocation6 + $0x290] ss:$12 sps:$4 sm:$0xff]  }
  0x5d   :  { %1007 = vmatprep.subr.bf16.mxu0 %v1483_v59  ;;  %1369 = vmatpush3.bf16.msra.mxu1 %v1492_v0  ;;  %v1520_v0 = vld [vmem:[#allocation6 + $0x1e4] ss:$12 sps:$4 sm:$0xff]  }
  0x5e   :  { %1370 = vmatprep.subr.bf16.mxu1 %v1495_v3  ;;  %v1518_v3 = vld [vmem:[#allocation6 + $0x1e0] ss:$12 sps:$4 sm:$0xff]  }
  0x60   :  { %1008 = vmatpush1.bf16.msra.mxu0 %v1486_v60 }
  0x61   :  { %1009 = vmatprep.subr.bf16.mxu0 %v1488_v61  ;;  %1371 = vmatpush3.bf16.msra.mxu1 %v1497_v5 }
  0x62   :  { %1378 = vmatprep.subr.bf16.mxu1 %v1501_v7  ;;  %v1526_v7 = vld [vmem:[#allocation6 + $0x2c0] ss:$12 sps:$4 sm:$0xff]  }
  0x64   :  { %1010 = vmatpush1.bf16.msra.mxu0 %v1491_v63  ;;  %v1517_v63 = vld [vmem:[#allocation6 + $0x1d0] ss:$12 sps:$4 sm:$0xff]  }
  0x65   :  { %1011 = vmatprep.subr.bf16.mxu0 %v1493_v1  ;;  %v1521_v1 = vld [vmem:[#allocation6 + $0x2a8] ss:$12 sps:$4 sm:$0xff]  }
  0x68   :  { %1012 = vmatpush1.bf16.msra.mxu0 %v1496_v4  ;;  %v1522_v4 = vld [vmem:[#allocation6 + $0x1e8] ss:$12 sps:$4 sm:$0xff]  }
  0x69   :  { %1024 = vmatprep.subr.bf16.mxu0 %v1500_v6  ;;  %v1525_v6 = vld [vmem:[#allocation6 + $0x1fc] ss:$12 sps:$4 sm:$0xff]  }
  0xff   :  { %v154_v14 = vpop.f32.mrb[0].mxu1 }
 0x100   :  { %v155_v15 = vadd.f32 %v154_v14, %v74_v12  ;;  %v156_v16 = vpop.f32.mrb[1].mxu1  ;;  %v1523_v14 = vld [vmem:[#allocation6 + $0x1f8] ss:$12 sps:$4 sm:$0xff]  }
 0x101   :  { %v157_v18 = vadd.f32 %v156_v16, %v78_v13  ;;  %v158_v19 = vpop.f32.mrb[2].mxu1  ;;  %v1530_v16 = vld [vmem:[#allocation6 + $0x214] ss:$12 sps:$4 sm:$0xff]  }
 0x102   :  { %v159_v21 = vadd.f32 %v158_v19, %v74_v12  ;;  %v160_v22 = vpop.f32.mrb[3].mxu1  ;;  %v206_v24 = vmax.f32 %v155_v15, 0.0  ;;  %v1527_v15 = vld [vmem:[#allocation6 + $0x200] ss:$12 sps:$4 sm:$0xff]   ;;  %v1528_v19 = vld [vmem:[#allocation6 + $0x210] ss:$12 sps:$4 sm:$0xff]  }
 0x103   :  { %v161_v23 = vadd.f32 %v160_v22, %v78_v13  ;;  %v207_v27 = vmax.f32 %v157_v18, 0.0  ;;  %v1531_v18 = vld [vmem:[#allocation6 + $0x2d8] ss:$12 sps:$4 sm:$0xff]   ;;  %v1536_v22 = vld [vmem:[#allocation6 + $0x2f0] ss:$12 sps:$4 sm:$0xff]  }
 0x104   :  { %v210_v25 = vmax.f32 %v159_v21, 0.0  ;;  %v1535_v21 = vld [vmem:[#allocation6 + $0x22c] ss:$12 sps:$4 sm:$0xff]  }
 0x105   :  { %v211_v28 = vmax.f32 %v161_v23, 0.0  ;;  %v1533_v23 = vld [vmem:[#allocation6 + $0x228] ss:$12 sps:$4 sm:$0xff]  }
 0x106   :  { %v214_v30 = vpack.c.bf16 %v210_v25, %v206_v24  ;;  %v1537_v24 = vld [vmem:[#allocation6 + $0x230] ss:$12 sps:$4 sm:$0xff]  }
 0x107   :  { %v215_v31 = vpack.c.bf16 %v211_v28, %v207_v27  ;;  %v197_v34 = vpop.f32.mrb[4].mxu1  ;;  %v1540_v25 = vld [vmem:[#allocation6 + $0x244] ss:$12 sps:$4 sm:$0xff]   ;;  %v1543_v27 = vld [vmem:[#allocation6 + $0x25c] ss:$12 sps:$4 sm:$0xff]  }
 0x108   :  { %v198_v37 = vadd.f32 %v197_v34, %v82_v26  ;;  %v199_v38 = vpop.f32.mrb[5].mxu1  ;;  %v1541_v28 = vld [vmem:[#allocation6 + $0x258] ss:$12 sps:$4 sm:$0xff]   ;;  %v1550_v34 = vld [vmem:[#allocation6 + $0x2a0] ss:$12 sps:$4 sm:$0xff]  }
 0x109   :  { %1013 = vmatprep.mubr.bf16.mxu0 %v215_v31  ;;  %1099 = vmatprep.mubr.bf16.mxu1 %v215_v31  ;;  %v200_v39 = vadd.f32 %v199_v38, %v86_v29  ;;  %v201_v40 = vpop.f32.mrb[6].mxu1  ;;  %v1549_v31 = vld [vmem:[#allocation6 + $0x28c] ss:$12 sps:$4 sm:$0xff]   ;;  %v1556_v38 = vld [vmem:[#allocation6 + $0x2d0] ss:$12 sps:$4 sm:$0xff]  }
 0x10a   :  { %1014 = vmatmul.mubr.bf16.vlgmr.msra.gmra.mrb[0].mxu0 %v214_v30  ;;  %1100 = vmatmul.mubr.bf16.vlgmr.msra.gmra.mrb[16].mxu1 %v214_v30  ;;  %v208_v41 = vmax.f32 %v198_v37, 0.0  ;;  %v202_v42 = vadd.f32 %v201_v40, %v82_v26  ;;  %v203_v43 = vpop.f32.mrb[7].mxu1  ;;  %v1538_v26 = vld [vmem:[#allocation6 + $0x240] ss:$12 sps:$4 sm:$0xff]   ;;  %v1544_v30 = vld [vmem:[#allocation6 + $0x270] ss:$12 sps:$4 sm:$0xff]  }
 0x10b   :  { %1025 = vmatpush1.bf16.msra.mxu0 %v1498_v32  ;;  %1379 = vmatpush3.bf16.msra.mxu1 %v1502_v33  ;;  %v209_v46 = vmax.f32 %v200_v39, 0.0  ;;  %v204_v47 = vadd.f32 %v203_v43, %v86_v29  ;;  %v1546_v29 = vld [vmem:[#allocation6 + $0x274] ss:$12 sps:$4 sm:$0xff]   ;;  %v1552_v33 = vld [vmem:[#allocation6 + $0x2a4] ss:$12 sps:$4 sm:$0xff]  }
 0x10c   :  { %1026 = vmatprep.subr.bf16.mxu0 %v1505_v35  ;;  %1380 = vmatprep.subr.bf16.mxu1 %v1506_v36  ;;  %v212_v50 = vmax.f32 %v202_v42, 0.0  ;;  %v1547_v32 = vld [vmem:[#allocation6 + $0x288] ss:$12 sps:$4 sm:$0xff]   ;;  %v1553_v36 = vld [vmem:[#allocation6 + $0x2b8] ss:$12 sps:$4 sm:$0xff]  }
 0x10d   :  { %v213_v51 = vmax.f32 %v204_v47, 0.0  ;;  %v1555_v35 = vld [vmem:[#allocation6 + $0x2bc] ss:$12 sps:$4 sm:$0xff]   ;;  %v1558_v37 = vld [vmem:[#allocation6 + $0x2d4] ss:$12 sps:$4 sm:$0xff]  }
 0x10e   :  { %v1755_v52 = vpack.c.bf16 %v212_v50, %v208_v41  ;;  %v1561_v39 = vld [vmem:[#allocation6 + $0x2ec] ss:$12 sps:$4 sm:$0xff]   ;;  %v1559_v40 = vld [vmem:[#allocation6 + $0x2e8] ss:$12 sps:$4 sm:$0xff]  }
 0x10f   :  { %1027 = vmatpush1.bf16.msra.mxu0 %v1503_v44  ;;  %1381 = vmatpush3.bf16.msra.mxu1 %v1507_v45  ;;  %v217_v55 = vpack.c.bf16 %v213_v51, %v209_v46  ;;  %v1757_v56 = vpop.f32.mrb[8].mxu1 }
 0x110   :  { %1028 = vmatprep.subr.bf16.mxu0 %v1510_v48  ;;  %1382 = vmatprep.subr.bf16.mxu1 %v1511_v49  ;;  %v1759_v59 = vpop.f32.mrb[9].mxu1 }
 0x111   :  { %1140 = vmatprep.mubr.bf16.mxu1 %v217_v55  ;;  %1056 = vmatprep.mubr.bf16.mxu0 %v217_v55  ;;  %v1761_v60 = vpop.f32.mrb[10].mxu1 }
 0x112   :  { %v1763_v61 = vpop.f32.mrb[11].mxu1 }
 0x113   :  { %1029 = vmatpush1.bf16.msra.mxu0 %v1508_v53  ;;  %1383 = vmatpush3.bf16.msra.mxu1 %v1512_v54 }
 0x114   :  { %1030 = vmatprep.subr.bf16.mxu0 %v1515_v57  ;;  %1384 = vmatprep.subr.bf16.mxu1 %v1516_v58 }
 0x117   :  { %1031 = vmatpush1.bf16.msra.mxu0 %v1513_v62  ;;  %1385 = vmatpush3.bf16.msra.mxu1 %v1517_v63  ;;  %v1765_v5 = vpop.f32.mrb[12].mxu1 }
 0x118   :  { %1032 = vmatprep.subr.bf16.mxu0 %v1520_v0  ;;  %1386 = vmatprep.subr.bf16.mxu1 %v1521_v1  ;;  %v1404_v9 = vpop.f32.mrb[13].mxu1 }
 0x119   :  { %v1767_v12 = vpop.f32.mrb[14].mxu1 }
 0x11a   :  { %v1405_v13 = vpop.f32.mrb[15].mxu1 }
 0x11b   :  { %1033 = vmatpush1.bf16.msra.mxu0 %v1518_v3  ;;  %1387 = vmatpush3.bf16.msra.mxu1 %v1522_v4 }
 0x11c   :  { %1034 = vmatprep.subr.bf16.mxu0 %v1525_v6  ;;  %1388 = vmatprep.subr.bf16.mxu1 %v1526_v7  ;;  %v1178_v7 = vld [vmem:[%s1814_s7] sm:$0x7] }
 0x11f   :  { %1035 = vmatpush1.bf16.msra.mxu0 %v1523_v14  ;;  %1389 = vmatpush3.bf16.msra.mxu1 %v1527_v15  ;;  %v1183_v14 = vrot.slane %v1178_v7, %v1740_v8 }
 0x120   :  { %1036 = vmatprep.subr.bf16.mxu0 %v1530_v16  ;;  %1390 = vmatprep.subr.bf16.mxu1 %v1531_v18 }
 0x123   :  { %1037 = vmatpush1.bf16.msra.mxu0 %v1528_v19  ;;  %1391 = vmatpush3.bf16.msra.mxu1 %v1532_v20 }
 0x124   :  { %1038 = vmatprep.subr.bf16.mxu0 %v1535_v21  ;;  %1392 = vmatprep.subr.bf16.mxu1 %v1536_v22 }
 0x127   :  { %1039 = vmatpush1.bf16.msra.mxu0 %v1533_v23  ;;  %1393 = vmatpush3.bf16.msra.mxu1 %v1537_v24  ;;  %v1191_v24 = vrot.slane %v1178_v7, %v1751_v17 }
 0x128   :  { %1040 = vmatprep.subr.bf16.mxu0 %v1540_v25 }
 0x12a   :  { %1141 = vmatmul.mubr.bf16.vlgmr.msra.gmra.mrb[20].mxu1 %v1755_v52 }
 0x12b   :  { %1041 = vmatpush1.bf16.msra.mxu0 %v1538_v26 }
 0x12c   :  { %1042 = vmatprep.subr.bf16.mxu0 %v1543_v27 }
 0x12f   :  { %1043 = vmatpush1.bf16.msra.mxu0 %v1541_v28 }
 0x130   :  { %1044 = vmatprep.subr.bf16.mxu0 %v1546_v29 }
 0x133   :  { %1045 = vmatpush1.bf16.msra.mxu0 %v1544_v30 }
 0x134   :  { %1046 = vmatprep.subr.bf16.mxu0 %v1549_v31 }
 0x137   :  { %1047 = vmatpush1.bf16.msra.mxu0 %v1547_v32 }
 0x138   :  { %1048 = vmatprep.subr.bf16.mxu0 %v1552_v33 }
 0x13b   :  { %1049 = vmatpush1.bf16.msra.mxu0 %v1550_v34  ;;  %v1216_v34 = vand.u32 127, %v71_v2 }
 0x13c   :  { %1050 = vmatprep.subr.bf16.mxu0 %v1555_v35 }
 0x13d   :  { %v1221_v35 = vadd.s32 4294967288, %v1216_v34 }
 0x13f   :  { %1051 = vmatpush1.bf16.msra.mxu0 %v1553_v36 }
 0x140   :  { %1052 = vmatprep.subr.bf16.mxu0 %v1558_v37  ;;  %v1219_v37 = vsub.s32 %v1216_v34, %v1723_v11 }
 0x143   :  { %1053 = vmatpush1.bf16.msra.mxu0 %v1556_v38 }
 0x144   :  { %1054 = vmatprep.subr.bf16.mxu0 %v1561_v39  ;;  %v1224_v39 = vsub.s32 %v1221_v35, %v1723_v11 }
 0x147   :  { %1055 = vmatpush1.bf16.msra.mxu0 %v1559_v40 }
 0x14a   :  { %1057 = vmatmul.mubr.bf16.vlgmr.msra.gmra.mrb[0].mxu0 %v1755_v52  ;;  %v1149_v52 = vld [vmem:[%s1813_s6] sm:$0x7] }
 0x14b   :  { %v1162_v62 = vrot.slane %v1149_v52, %v1751_v17  ;;  %v1154_v63 = vrot.slane %v1149_v52, %v1740_v8  ;;  %v1158_v1 = vrot.slane %v1149_v52, %v1746_v10  ;;  %v1210_v17 = vstv %s1815_s8  ;;  %s1610_s8 = scalar_lea.vmem %s1238_s23, 32 }
 0x14c   :  { %p1612_p4 = scmp.lt.s32.totalorder %s1610_s8, %s1606_s24 }
 0x14e   :  { %p1613_p5 = por %p1612_p4, %p1611_p3 }
 0x150   :  { %p1614_p6 = pnand %p1613_p5, %p1607_p2 }
 0x1dd   :  { %v1372_v41 = vpop.f32.mrb[16].mxu1 }
 0x1de   :  { %v1373_v42 = vpop.f32.mrb[17].mxu1 }
 0x1df   :  { %v1374_v43 = vadd.f32 %v1373_v42, %v1372_v41  ;;  %v1375_v44 = vpop.f32.mrb[18].mxu1 }
 0x1e0   :  { %v1376_v45 = vpop.f32.mrb[19].mxu1 }
 0x1e1   :  { %v1102_v46 = vadd.f32 %v1374_v43, %v1765_v5  ;;  %v1377_v47 = vadd.f32 %v1376_v45, %v1375_v44 }
 0x1e3   :  { %v1105_v48 = vadd.f32 %v1377_v47, %v1767_v12 }
 0x1fd   :  { %v1394_v49 = vpop.f32.mrb[20].mxu1 }
 0x1fe   :  { %v1395_v50 = vpop.f32.mrb[21].mxu1 }
 0x1ff   :  { %v1396_v51 = vadd.f32 %v1395_v50, %v1394_v49  ;;  %v1397_v53 = vpop.f32.mrb[22].mxu1 }
 0x200   :  { %v1398_v54 = vpop.f32.mrb[23].mxu1 }
 0x201   :  { %v1143_v55 = vadd.f32 %v1396_v51, %v1102_v46  ;;  %v1399_v57 = vadd.f32 %v1398_v54, %v1397_v53 }
 0x203   :  { %v1146_v58 = vadd.f32 %v1399_v57, %v1105_v48  ;;  %v1168_v9 = vadd.f32 %v1162_v62, %v1143_v55 }
 0x205   :  { %v1171_v16 = vadd.f32 %v1162_v62, %v1146_v58  ;;  %v1174_v23 = vmax.f32 %v1168_v9, 0.0 }
 0x207   :  { %v1177_v27 = vmax.f32 %v1171_v16, 0.0  ;;  %v1197_v30 = vmul.f32 %v1191_v24, %v1174_v23 }
 0x21d   :  { %v1058_v0 = vpop.f32.mrb[0].mxu0 }
 0x21e   :  { %v1406_v3 = vadd.f32 %v1058_v0, %v1757_v56  ;;  %v1060_v4 = vpop.f32.mrb[1].mxu0  ;;  %v1187_v56 = vrot.slane %v1178_v7, %v1746_v10 }
 0x21f   :  { %v1407_v5 = vadd.f32 %v1060_v4, %v1759_v59  ;;  %v1062_v6 = vpop.f32.mrb[2].mxu0 }
 0x220   :  { %v1166_v12 = vadd.f32 %v1406_v3, %v1154_v63  ;;  %v1408_v13 = vadd.f32 %v1062_v6, %v1761_v60  ;;  %v1064_v15 = vpop.f32.mrb[3].mxu0 }
 0x221   :  { %v1167_v18 = vadd.f32 %v1407_v5, %v1158_v1  ;;  %v1409_v19 = vadd.f32 %v1064_v15, %v1763_v61  ;;  %v1200_v61 = vmul.f32 %v1191_v24, %v1177_v27 }
 0x222   :  { %v1172_v20 = vmax.f32 %v1166_v12, 0.0  ;;  %v1169_v59 = vadd.f32 %v1408_v13, %v1154_v63 }
 0x223   :  { %v1173_v21 = vmax.f32 %v1167_v18, 0.0  ;;  %v1170_v22 = vadd.f32 %v1409_v19, %v1158_v1 }
 0x224   :  { %v1175_v25 = vmax.f32 %v1169_v59, 0.0  ;;  %v1195_v26 = vmul.f32 %v1183_v14, %v1172_v20 }
 0x225   :  { %v1176_v60 = vmax.f32 %v1170_v22, 0.0  ;;  %v1196_v28 = vmul.f32 %v1187_v56, %v1173_v21 }
 0x226   :  { %v1198_v8 = vmul.f32 %v1183_v14, %v1175_v25 }
 0x227   :  { %v1199_v29 = vmul.f32 %v1187_v56, %v1176_v60  ;;  %v1201_v31 = vadd.f32 %v1196_v28, %v1195_v26 }
 0x229   :  { %v1202_v32 = vadd.f32 %v1201_v31, %v1197_v30  ;;  %v1205_v33 = vadd.f32 %v1199_v29, %v1198_v8 }
 0x22b   :  { %1203 = vadd.xlane.f32.xlu0 %v1202_v32  ;;  %v1206_v10 = vadd.f32 %v1205_v33, %v1200_v61 }
 0x22f   :  { %1207 = vadd.xlane.f32.xlu0 %v1206_v10 }
 0x2b8   :  { %v1204_v36 = vpop.xlane.xlu0 %1203 }
 0x2b9   :  { %v1211_v38 = vadd.f32 %v1210_v17, %v1204_v36 }
 0x2bb   :  { %v1220_v42 = vrot.slane %v1211_v38, %v1219_v37 }
 0x2bc   :  { %v1208_v40 = vpop.xlane.xlu0 %1207 }
 0x2bd   :  { %v1212_v41 = vadd.f32 %v1210_v17, %v1208_v40 }
 0x2bf   :  { %v1225_v43 = vrot.slane %v1212_v41, %v1224_v39 }
 0x2c1   :  { %v1227_v2 = vsel %vm1226_vm4, %v1225_v43, %v1220_v42 }
 0x2c2   :  { %1230 = vst.msk [vmem:[#allocation8] sm:$0x1] %vm1229_vm5, %v1227_v2 }
 0x2c3   :  { %1617 = shalt.err (!%p1614_p6)
}
 0x2c4   :  { %s1618_s27 = scalar_lea.hbm %s1816_s9, 16 }
 0x2c5   :  { %p1619_p7 = scmp.ne.s32.totalorder %s1816_s9, %s1618_s27  ;;  %p1622_p8 = scmp.lt.u32.totalorder %s1618_s27, %s1816_s9 }
 0x2c7   :  { %p1624_p9 = pnand %p1622_p8, %p1619_p7 }
 0x2c9   :  { %1627 = shalt.err (!%p1624_p9)
}
 0x2ca   :  { %1240 = dma.vmem_to_hbm [thread:$0]  %s1238_s23, 16, %s1816_s9, [#allocation5]  }
 0x2cb   :  { %1632 = dma.done.wait [#allocation5], 16  }
 0x2cc   :  { %1633 = vsyncadd [#allocation5], 4294967280 }
 0x2cd   :  { %1244 = vsyncpa [#allocation4], 1 }
 0x2ce   :  { %1245 = vsyncpa [#allocation7], 1 }
 0x2cf   :  { %1246 = vsyncpa [#allocation5], 1 }

</bundles_post_ra>
